<compile_context>
chip_gen: v7x
topology: tpu7x:2x2x1
jax: 0.10.0
libtpu: 0.0.40
codegen_flags: <defaults>
</compile_context>

<pallas_src>
import jax
import jax.numpy as jnp
from jax.experimental import pallas as pl
from jax.experimental.pallas import tpu as pltpu

# ---- shapes (small, consistent with the module's forward) --------------------
N = 2            # batch
P0 = 128         # raw number of points
SUB = 2          # subsample stride (stand-in for voxel-grid subsampling)
P = P0 // SUB    # points after subsample = 64
D = 3            # xyz coordinates
H = 32           # hidden width of the point-wise backbone stand-in
C = 32           # backbone output channels
E = 8            # output_embed_size (AdaptiveMax/AvgPool1d output length)
W = P // E       # uniform adaptive-pool window width (P % E == 0 => 8)

assert P % E == 0, "adaptive-pool equivalence below requires P % E == 0"
assert P0 % SUB == 0

# Packed-parameter slab layout: every sub-block starts on an 8-sublane
# boundary so in-kernel static slices never need sublane shifts.
W1_OFF = 0                    # rows [0, D)        : w1  (D, H)
B1_OFF = 8                    # row  8             : b1  (1, H)
W2_OFF = 16                   # rows [16, 16+H)    : w2  (H, C)
B2_OFF = W2_OFF + H           # row  48            : b2  (1, C)
PARAM_ROWS = B2_OFF + 8       # 56 (8-multiple)
PARAM_COLS = max(H, C)        # 32


# ---- Pallas kernel: subsample + backbone MLP + (max-pool + avg-pool) ---------
def pcf_encoder_kernel(x_ref, p_ref, out_ref):
    # Fused strided subsample: rows 0, SUB, 2*SUB, ... of the flat (N*P0, D)
    # point slab equal x[:, ::SUB, :] flattened, because batches occupy
    # contiguous P0-row blocks and P0 % SUB == 0.
    sub_rows = x_ref.shape[0] // SUB                       # N*P = 128
    x = x_ref[pl.ds(0, sub_rows, stride=SUB), :]           # (N*P, D)

    w1 = p_ref[W1_OFF:W1_OFF + D, :]                       # (D, H)
    b1 = p_ref[B1_OFF:B1_OFF + 1, :]                       # (1, H)
    w2 = p_ref[W2_OFF:W2_OFF + H, :]                       # (H, C)
    b2 = p_ref[B2_OFF:B2_OFF + 1, :]                       # (1, C)

    # Layer 1: one MXU matmul (K=3 zero-padded by Mosaic).  The two layers
    # are serial, so nothing else competes for the MXU here.
    h = jnp.dot(x, w1, preferred_element_type=jnp.float32) + b1
    h = jnp.maximum(h, 0.0)                                # (N*P, H)

    # Layer 2: MXU matmul over all batches at once (M = 128).
    f = jnp.dot(h, w2, preferred_element_type=jnp.float32) + b2
    f = jnp.maximum(f, 0.0)                                # (N*P, C)

    # Adaptive max + avg pooling over the point axis.  P % E == 0 gives
    # uniform windows of width W; batches occupy contiguous P = E*W row
    # blocks, so grouping the flat (N*P) axis into (N*E, W) respects batch
    # boundaries.  W == 8 matches the sublane tile height.  The window sum
    # is computed once and reused for the mean (single reduction pass).
    groups = out_ref.shape[0]                              # N*E
    w = f.shape[0] // groups                               # W
    fr = f.reshape(groups, w, f.shape[1])                  # (N*E, W, C)
    wsum = jnp.sum(fr, axis=1)                             # (N*E, C)
    out_ref[...] = jnp.max(fr, axis=1) + wsum * (1.0 / w)  # (N*E, C)


def pack_params(w1, b1, w2, b2):
    """One-time wrapper-side packing of the 4 parameter arrays into 1 slab."""
    p = jnp.zeros((PARAM_ROWS, PARAM_COLS), jnp.float32)
    p = p.at[W1_OFF:W1_OFF + D, :H].set(w1)
    p = p.at[B1_OFF, :H].set(b1.reshape(H))
    p = p.at[W2_OFF:W2_OFF + H, :C].set(w2)
    p = p.at[B2_OFF, :C].set(b2.reshape(C))
    return p


def pcf_encoder(x_raw, params):
    """x_raw: (N, P0, D) raw points; params: packed (PARAM_ROWS, PARAM_COLS)."""
    n, p0, d = x_raw.shape
    x_flat = x_raw.reshape(n * p0, d)     # zero-copy flatten, no data movement

    vmem_spec = pl.BlockSpec(memory_space=pltpu.MemorySpace.VMEM)
    pooled = pl.pallas_call(
        pcf_encoder_kernel,
        out_shape=jax.ShapeDtypeStruct((n * E, C), jnp.float32),
        in_specs=[vmem_spec, vmem_spec],
        out_specs=vmem_spec,
    )(x_flat, params)                     # (N*E, C)

    # Final NCL layout (PyTorch AdaptiveXPool1d convention) is wrapper-side
    # layout plumbing — kept out of the kernel so stores stay dense.
    return pooled.reshape(n, E, C).transpose(0, 2, 1)      # (N, C, E)


# ---- pure-JAX reference (same math) for validation ---------------------------
def reference(x_raw, w1, b1, w2, b2):
    x_sub = x_raw[:, ::SUB, :]                             # (N, P, D)
    h = jnp.maximum(
        jnp.einsum("npd,dh->nph", x_sub, w1, precision="highest") + b1, 0.0)
    f = jnp.maximum(
        jnp.einsum("nph,hc->npc", h, w2, precision="highest") + b2, 0.0)
    fcl = jnp.transpose(f, (0, 2, 1))                      # (N, C, P)
    fr = fcl.reshape(N, C, E, W)
    return jnp.max(fr, axis=-1) + jnp.mean(fr, axis=-1)    # (N, C, E)


if __name__ == "__main__":
    key = jax.random.PRNGKey(0)
    kx, k1, k2, kb1, kb2 = jax.random.split(key, 5)

    # raw point cloud (N, P0, 3)
    x = jax.random.normal(kx, (N, P0, D), dtype=jnp.float32)

    # TODO(synk): subsample_and_knn's voxel-grid subsampling + KNN graph build is a
    # data-dependent gather/sort with no provided definition; a deterministic strided
    # subsample (fused into the kernel via pl.ds stride) is used instead.
    # TODO(synk): PCF_Normal backbone weights are external; a deterministic
    # 2-layer point-wise MLP stand-in is used (cast to bf16 at the MXU inputs
    # once a real, larger backbone replaces it).
    w1 = 0.1 * jax.random.normal(k1, (D, H), dtype=jnp.float32)
    b1 = 0.1 * jax.random.normal(kb1, (1, H), dtype=jnp.float32)
    w2 = 0.1 * jax.random.normal(k2, (H, C), dtype=jnp.float32)
    b2 = 0.1 * jax.random.normal(kb2, (1, C), dtype=jnp.float32)

    params = pack_params(w1, b1, w2, b2)

    out = pcf_encoder(x, params)
    out = jax.block_until_ready(out)

    ref = reference(x, w1, b1, w2, b2)
    assert out.shape == (N, C, E)
    assert jnp.allclose(out, ref, atol=1e-5, rtol=1e-5), "mismatch vs reference"

    print("KERNEL_OK")
</pallas_src>

<mosaic_0001>
module attributes {stable_mosaic.version = 11 : i64} {
  func.func @pcf_encoder_kernel(%arg0: memref<256x3xf32, #tpu.memory_space<vmem>>, %arg1: memref<56x32xf32, #tpu.memory_space<vmem>>, %arg2: memref<16x32xf32, #tpu.memory_space<vmem>>) attributes {dimension_semantics = [], scalar_prefetch = 0 : i64, scratch_operands = 0 : i64, tpu.core_type = #tpu.core_type<tc>} {
    %c0 = arith.constant 0 : index
    %c0_0 = arith.constant 0 : index
    %0 = tpu.strided_load %arg0[%c0, %c0_0] {strides = array<i32: 2, 1>} : memref<256x3xf32, #tpu.memory_space<vmem>>, vector<128x3xf32>
    %c0_1 = arith.constant 0 : index
    %c0_2 = arith.constant 0 : index
    %1 = vector.load %arg1[%c0_1, %c0_2] : memref<56x32xf32, #tpu.memory_space<vmem>>, vector<3x32xf32>
    %c8 = arith.constant 8 : index
    %c0_3 = arith.constant 0 : index
    %2 = vector.load %arg1[%c8, %c0_3] : memref<56x32xf32, #tpu.memory_space<vmem>>, vector<1x32xf32>
    %c16 = arith.constant 16 : index
    %c0_4 = arith.constant 0 : index
    %3 = vector.load %arg1[%c16, %c0_4] : memref<56x32xf32, #tpu.memory_space<vmem>>, vector<32x32xf32>
    %c48 = arith.constant 48 : index
    %c0_5 = arith.constant 0 : index
    %4 = vector.load %arg1[%c48, %c0_5] : memref<56x32xf32, #tpu.memory_space<vmem>>, vector<1x32xf32>
    %cst = arith.constant dense<0.000000e+00> : vector<128x32xf32>
    %5 = tpu.matmul %0, %1, %cst {dimension_numbers = #tpu.dot_dimension_numbers<[1], [0], [0], [1], [0, 0, 1, 1], [], []>} : vector<128x3xf32>, vector<3x32xf32>, vector<128x32xf32> -> vector<128x32xf32>
    %6 = vector.broadcast %2 : vector<1x32xf32> to vector<128x32xf32>
    %7 = arith.addf %5, %6 : vector<128x32xf32>
    %cst_6 = arith.constant 0.000000e+00 : f32
    %8 = vector.broadcast %cst_6 : f32 to vector<128x32xf32>
    %9 = arith.maximumf %7, %8 : vector<128x32xf32>
    %cst_7 = arith.constant dense<0.000000e+00> : vector<128x32xf32>
    %10 = tpu.matmul %9, %3, %cst_7 {dimension_numbers = #tpu.dot_dimension_numbers<[1], [0], [0], [1], [0, 0, 1, 1], [], []>} : vector<128x32xf32>, vector<32x32xf32>, vector<128x32xf32> -> vector<128x32xf32>
    %11 = vector.broadcast %4 : vector<1x32xf32> to vector<128x32xf32>
    %12 = arith.addf %10, %11 : vector<128x32xf32>
    %cst_8 = arith.constant 0.000000e+00 : f32
    %13 = vector.broadcast %cst_8 : f32 to vector<128x32xf32>
    %14 = arith.maximumf %12, %13 : vector<128x32xf32>
    %15 = vector.shape_cast %14 : vector<128x32xf32> to vector<16x8x32xf32>
    %cst_9 = arith.constant dense<0.000000e+00> : vector<16x32xf32>
    %16 = vector.multi_reduction <add>, %15, %cst_9 [1] : vector<16x8x32xf32> to vector<16x32xf32>
    %cst_10 = arith.constant dense<0xFF800000> : vector<16x32xf32>
    %17 = vector.multi_reduction <maximumf>, %15, %cst_10 [1] : vector<16x8x32xf32> to vector<16x32xf32>
    %cst_11 = arith.constant 1.250000e-01 : f32
    %18 = vector.broadcast %cst_11 : f32 to vector<16x32xf32>
    %19 = arith.mulf %16, %18 : vector<16x32xf32>
    %20 = arith.addf %17, %19 : vector<16x32xf32>
    %c0_12 = arith.constant 0 : index
    %c0_13 = arith.constant 0 : index
    %21 = vector.load %arg2[%c0_12, %c0_13] : memref<16x32xf32, #tpu.memory_space<vmem>>, vector<16x32xf32>
    tpu.vector_store %arg2[%c0_12, %c0_13], %20 {strides = array<i32>} : memref<16x32xf32, #tpu.memory_space<vmem>>, vector<16x32xf32>,
    return
  }
}

</mosaic_0001>

<bundles_post_ra>
// kernel: tpu_custom_call.1
= control target key start
LH: loop header
LB: loop body
LE: loop exit
PB: predicated region body
PF: predicated region fallthrough
CT: control target
= control target key end

     0   :  { %vm103_vm0 = vcmask 1042432   ;;  %vm54_vm1 = vcmask 23552   ;;  %s1208_s0 = inlined_call_operand.vmem [shape: f32[256,3], index: 0, kind: input, shape index: {}]   ;;  %s1209_s1 = inlined_call_operand.vmem [shape: f32[56,32], index: 1, kind: input, shape index: {}]   ;;  %s1210_s2 = inlined_call_operand.hbm [shape: f32[16,32], index: 2, kind: output, shape index: {}]  }
   0x1   :  { %v43_v0 = vld [vmem:[%s1209_s1] sm:$0x7]  ;;  %v795_v2 = vld [vmem:[%s1208_s0 + $0x10] ss:$2 sm:$0xff] }
   0x2   :  { %v12_v1 = vld [vmem:[%s1208_s0] ss:$2 sm:$0xff]  ;;  %882 = vmatprep.subr.msk.mxu0 %vm103_vm0, %v43_v0  ;;  %v797_v4 = vld [vmem:[%s1208_s0 + $0x30] ss:$2 sm:$0xff] }
   0x3   :  { %884 = vmatprep.mubr.msk.f32.mxu0 %vm54_vm1, %v12_v1  ;;  %v796_v3 = vld [vmem:[%s1208_s0 + $0x20] ss:$2 sm:$0xff]  ;;  %883 = vmatpush3.msk.msra.mxu0 %vm103_vm0, %v43_v0  ;;  %v45_v6 = vld [vmem:[%s1209_s1 + $0x10] sm:$0xff]  ;;  %v46_v7 = vld [vmem:[%s1209_s1 + $0x18] sm:$0xff] }
   0x4   :  { %885 = vmatmul.mubr.msk.f32.vlgmr.msra.gmra.mrb[0].mxu0 %vm54_vm1, %v795_v2  ;;  %v798_v5 = vld [vmem:[%s1208_s0 + $0x40] ss:$2 sm:$0xff] }
   0x5   :  { %887 = vmatprep.mubr.msk.f32.mxu0 %vm54_vm1, %v796_v3 }
   0x6   :  { %7 = vsyncpa [#allocation3], 0  ;;  %v940_v8 = vpack.c.bf16 %v46_v7, %v45_v6  ;;  %v799_v9 = vld [vmem:[%s1208_s0 + $0x50] ss:$2 sm:$0xff]  ;;  %v800_v10 = vld [vmem:[%s1208_s0 + $0x60] ss:$2 sm:$0xff] }
   0x7   :  { %v801_v11 = vld [vmem:[%s1208_s0 + $0x70] ss:$2 sm:$0xff]  ;;  %v802_v12 = vld [vmem:[%s1208_s0 + $0x80] ss:$2 sm:$0xff]  ;;  %vm272_vm2 = vcmask 261120   ;;  %vm754_vm3 = vcmask 1041409  }
   0x8   :  { %888 = vmatmul.mubr.msk.f32.gmra.mrb[2].mxu0 %vm54_vm1, %v797_v4  ;;  %941 = vmatprep.subr.bf16.mxu1 %v940_v8  ;;  %v803_v13 = vld [vmem:[%s1208_s0 + $0x90] ss:$2 sm:$0xff]  ;;  %v804_v14 = vld [vmem:[%s1208_s0 + $0xa0] ss:$2 sm:$0xff]  ;;  %vm756_vm4 = vcmask 1042434   ;;  %vm758_vm5 = vcmask 1043459  }
   0x9   :  { %890 = vmatprep.mubr.msk.f32.mxu0 %vm54_vm1, %v798_v5  ;;  %943 = vmatpush3.bf16.msra.mxu1 %v940_v8  ;;  %v805_v15 = vld [vmem:[%s1208_s0 + $0xb0] ss:$2 sm:$0xff]  ;;  %v806_v16 = vld [vmem:[%s1208_s0 + $0xc0] ss:$2 sm:$0xff]  ;;  %vm760_vm6 = vcmask 1044484   ;;  %vm762_vm7 = vcmask 1045509  }
   0xa   :  { %v807_v17 = vld [vmem:[%s1208_s0 + $0xd0] ss:$2 sm:$0xff]  ;;  %v808_v18 = vld [vmem:[%s1208_s0 + $0xe0] ss:$2 sm:$0xff]  ;;  %vm764_vm8 = vcmask 1046534   ;;  %vm766_vm9 = vcmask 1047559  }
   0xb   :  { %v809_v19 = vld [vmem:[%s1208_s0 + $0xf0] ss:$2 sm:$0xff]  ;;  %v47_v20 = vld [vmem:[%s1209_s1 + $0x20] sm:$0xff]  ;;  %v48_v21 = vld [vmem:[%s1209_s1 + $0x28] sm:$0xff] }
   0xc   :  { %891 = vmatmul.mubr.msk.f32.gmra.mrb[4].mxu0 %vm54_vm1, %v799_v9  ;;  %v944_v22 = vpack.c.bf16 %v48_v21, %v47_v20  ;;  %v810_v23 = vld [vmem:[%s1209_s1 + $0x8] ss:$0 sm:$0xff]  ;;  %v1094_v8 = vld [vmem:[%s1209_s1 + $0x30] ss:$0 sm:$0xff]  ;;  %s975_s1 = smov [#allocation2]  }
   0xd   :  { %893 = vmatprep.mubr.msk.f32.mxu0 %vm54_vm1, %v800_v10  ;;  %s784_s26 = sshll.u32 %s975_s1, 4  ;;  %s785_s26 = int_to_ptr.vmem [resolvable:$true] %s784_s26 }
   0xe   :  { %945 = vmatprep.subr.bf16.mxu1 %v944_v22  ;;  %s951_s27 = scalar_lea.vmem %s785_s26, 256  ;;  %p956_p1 = scmp.lt.s32.totalorder %s785_s26, %s785_s26 }
   0xf   :  { %947 = vmatpush3.bf16.msra.mxu1 %v944_v22  ;;  %p952_p0 = scmp.ne.s32.totalorder %s785_s26, %s951_s27  ;;  %p957_p2 = scmp.lt.s32.totalorder %s951_s27, %s951_s27 }
  0x10   :  { %894 = vmatmul.mubr.msk.f32.gmra.mrb[6].mxu0 %vm54_vm1, %v801_v11 }
  0x11   :  { %896 = vmatprep.mubr.msk.f32.mxu0 %vm54_vm1, %v802_v12  ;;  %p958_p3 = por %p957_p2, %p956_p1 }
  0x13   :  { %p959_p4 = pnand %p958_p3, %p952_p0 }
  0x14   :  { %897 = vmatmul.mubr.msk.f32.gmra.mrb[8].mxu0 %vm54_vm1, %v803_v13 }
  0x15   :  { %899 = vmatprep.mubr.msk.f32.mxu0 %vm54_vm1, %v804_v14 }
  0x18   :  { %900 = vmatmul.mubr.msk.f32.gmra.mrb[10].mxu0 %vm54_vm1, %v805_v15 }
  0x19   :  { %902 = vmatprep.mubr.msk.f32.mxu0 %vm54_vm1, %v806_v16 }
  0x1c   :  { %903 = vmatmul.mubr.msk.f32.gmra.mrb[12].mxu0 %vm54_vm1, %v807_v17 }
  0x1d   :  { %905 = vmatprep.mubr.msk.f32.mxu0 %vm54_vm1, %v808_v18 }
  0x20   :  { %906 = vmatmul.mubr.msk.f32.gmra.mrb[14].mxu0 %vm54_vm1, %v809_v19 }
  0xd7   :  { %v886_v24 = vpop.f32.mrb[0].mxu0 }
  0xd8   :  { %v179_v25 = vadd.f32 %v886_v24, %v810_v23  ;;  %v173_v26 = vpop.f32.mrb[1].mxu0 }
  0xd9   :  { %v174_v27 = vadd.f32 %v810_v23, %v173_v26 }
  0xda   :  { %v253_v30 = vmax.f32 %v179_v25, 0.0 }
  0xdb   :  { %v252_v28 = vmax.f32 %v174_v27, 0.0  ;;  %v889_v29 = vpop.f32.mrb[2].mxu0 }
  0xdc   :  { %v189_v31 = vadd.f32 %v889_v29, %v810_v23  ;;  %v183_v32 = vpop.f32.mrb[3].mxu0 }
  0xdd   :  { %v184_v33 = vadd.f32 %v810_v23, %v183_v32  ;;  %916 = vmatprep.mubr.msk.f32.mxu1 %vm272_vm2, %v252_v28 }
  0xde   :  { %917 = vmatmul.mubr.msk.f32.vlgmr.msra.gmra.mrb[0].mxu1 %vm272_vm2, %v253_v30  ;;  %v255_v36 = vmax.f32 %v189_v31, 0.0 }
  0xdf   :  { %v254_v34 = vmax.f32 %v184_v33, 0.0  ;;  %v892_v35 = vpop.f32.mrb[4].mxu0 }
  0xe0   :  { %v199_v37 = vadd.f32 %v892_v35, %v810_v23  ;;  %v193_v38 = vpop.f32.mrb[5].mxu0 }
  0xe1   :  { %v194_v39 = vadd.f32 %v810_v23, %v193_v38  ;;  %919 = vmatprep.mubr.msk.f32.mxu1 %vm272_vm2, %v254_v34 }
  0xe2   :  { %920 = vmatmul.mubr.msk.f32.gmra.mrb[2].mxu1 %vm272_vm2, %v255_v36  ;;  %v257_v42 = vmax.f32 %v199_v37, 0.0 }
  0xe3   :  { %v256_v40 = vmax.f32 %v194_v39, 0.0  ;;  %v895_v41 = vpop.f32.mrb[6].mxu0 }
  0xe4   :  { %v209_v43 = vadd.f32 %v895_v41, %v810_v23  ;;  %v203_v44 = vpop.f32.mrb[7].mxu0 }
  0xe5   :  { %v204_v45 = vadd.f32 %v810_v23, %v203_v44  ;;  %922 = vmatprep.mubr.msk.f32.mxu1 %vm272_vm2, %v256_v40 }
  0xe6   :  { %923 = vmatmul.mubr.msk.f32.gmra.mrb[4].mxu1 %vm272_vm2, %v257_v42  ;;  %v259_v48 = vmax.f32 %v209_v43, 0.0 }
  0xe7   :  { %v258_v46 = vmax.f32 %v204_v45, 0.0  ;;  %v898_v47 = vpop.f32.mrb[8].mxu0 }
  0xe8   :  { %v219_v49 = vadd.f32 %v898_v47, %v810_v23  ;;  %v213_v50 = vpop.f32.mrb[9].mxu0 }
  0xe9   :  { %v214_v51 = vadd.f32 %v810_v23, %v213_v50  ;;  %925 = vmatprep.mubr.msk.f32.mxu1 %vm272_vm2, %v258_v46 }
  0xea   :  { %926 = vmatmul.mubr.msk.f32.gmra.mrb[6].mxu1 %vm272_vm2, %v259_v48  ;;  %v261_v54 = vmax.f32 %v219_v49, 0.0 }
  0xeb   :  { %v260_v52 = vmax.f32 %v214_v51, 0.0  ;;  %v901_v53 = vpop.f32.mrb[10].mxu0 }
  0xec   :  { %v229_v55 = vadd.f32 %v901_v53, %v810_v23  ;;  %v223_v56 = vpop.f32.mrb[11].mxu0 }
  0xed   :  { %v224_v57 = vadd.f32 %v810_v23, %v223_v56  ;;  %928 = vmatprep.mubr.msk.f32.mxu1 %vm272_vm2, %v260_v52 }
  0xee   :  { %929 = vmatmul.mubr.msk.f32.gmra.mrb[8].mxu1 %vm272_vm2, %v261_v54  ;;  %v263_v60 = vmax.f32 %v229_v55, 0.0 }
  0xef   :  { %v262_v58 = vmax.f32 %v224_v57, 0.0  ;;  %v904_v59 = vpop.f32.mrb[12].mxu0 }
  0xf0   :  { %v239_v61 = vadd.f32 %v904_v59, %v810_v23  ;;  %v233_v62 = vpop.f32.mrb[13].mxu0 }
  0xf1   :  { %v234_v63 = vadd.f32 %v810_v23, %v233_v62  ;;  %931 = vmatprep.mubr.msk.f32.mxu1 %vm272_vm2, %v262_v58 }
  0xf2   :  { %932 = vmatmul.mubr.msk.f32.gmra.mrb[10].mxu1 %vm272_vm2, %v263_v60  ;;  %v265_v2 = vmax.f32 %v239_v61, 0.0 }
  0xf3   :  { %v264_v0 = vmax.f32 %v234_v63, 0.0  ;;  %v907_v1 = vpop.f32.mrb[14].mxu0 }
  0xf4   :  { %v249_v3 = vadd.f32 %v907_v1, %v810_v23  ;;  %v243_v4 = vpop.f32.mrb[15].mxu0 }
  0xf5   :  { %v244_v5 = vadd.f32 %v810_v23, %v243_v4  ;;  %934 = vmatprep.mubr.msk.f32.mxu1 %vm272_vm2, %v264_v0 }
  0xf6   :  { %935 = vmatmul.mubr.msk.f32.gmra.mrb[12].mxu1 %vm272_vm2, %v265_v2  ;;  %v267_v7 = vmax.f32 %v249_v3, 0.0 }
  0xf7   :  { %v266_v6 = vmax.f32 %v244_v5, 0.0 }
  0xf9   :  { %937 = vmatprep.mubr.msk.f32.mxu1 %vm272_vm2, %v266_v6 }
  0xfa   :  { %938 = vmatmul.mubr.msk.f32.gmra.mrb[14].mxu1 %vm272_vm2, %v267_v7 }
 0x1b1   :  { %v918_v9 = vpop.f32.mrb[0].mxu1 }
 0x1b2   :  { %v393_v10 = vadd.f32 %v918_v9, %v1094_v8  ;;  %v387_v11 = vpop.f32.mrb[1].mxu1 }
 0x1b3   :  { %v388_v12 = vadd.f32 %v1094_v8, %v387_v11 }
 0x1b4   :  { %v467_v13 = vmax.f32 %v393_v10, 0.0 }
 0x1b5   :  { %v466_v14 = vmax.f32 %v388_v12, 0.0  ;;  %v921_v15 = vpop.f32.mrb[2].mxu1 }
 0x1b6   :  { %v489_v16 = vsel %vm272_vm2, %v467_v13, 0.0  ;;  %v601_v17 = vsel %vm272_vm2, %v467_v13, -inf  ;;  %v403_v18 = vadd.f32 %v921_v15, %v1094_v8  ;;  %v397_v19 = vpop.f32.mrb[3].mxu1 }
 0x1b7   :  { %v490_v20 = vrot.slane %v489_v16, 4  ;;  %v602_v21 = vrot.slane %v601_v17, 4  ;;  %v482_v22 = vsel %vm272_vm2, %v466_v14, 0.0  ;;  %v594_v23 = vsel %vm272_vm2, %v466_v14, -inf }
 0x1b8   :  { %v483_v24 = vrot.slane %v482_v22, 4  ;;  %v595_v25 = vrot.slane %v594_v23, 4  ;;  %v469_v26 = vmax.f32 %v403_v18, 0.0  ;;  %v398_v27 = vadd.f32 %v1094_v8, %v397_v19 }
 0x1b9   :  { %v491_v28 = vadd.f32 %v490_v20, %v489_v16  ;;  %v603_v29 = vmax.f32 %v601_v17, %v602_v21  ;;  %v924_v30 = vpop.f32.mrb[4].mxu1 }
 0x1ba   :  { %v484_v31 = vadd.f32 %v483_v24, %v482_v22  ;;  %v596_v32 = vmax.f32 %v594_v23, %v595_v25  ;;  %v503_v33 = vsel %vm272_vm2, %v469_v26, 0.0  ;;  %v615_v34 = vsel %vm272_vm2, %v469_v26, -inf  ;;  %v407_v35 = vpop.f32.mrb[5].mxu1 }
 0x1bb   :  { %v492_v36 = vrot.slane %v491_v28, 2  ;;  %v604_v37 = vrot.slane %v603_v29, 2  ;;  %v504_v38 = vrot.slane %v503_v33, 4  ;;  %v616_v39 = vrot.slane %v615_v34, 4 }
 0x1bc   :  { %v485_v40 = vrot.slane %v484_v31, 2  ;;  %v597_v41 = vrot.slane %v596_v32, 2  ;;  %v468_v42 = vmax.f32 %v398_v27, 0.0  ;;  %v413_v43 = vadd.f32 %v924_v30, %v1094_v8 }
 0x1bd   :  { %v493_v44 = vadd.f32 %v492_v36, %v491_v28  ;;  %v605_v45 = vmax.f32 %v603_v29, %v604_v37  ;;  %v505_v46 = vadd.f32 %v504_v38, %v503_v33  ;;  %v617_v47 = vmax.f32 %v615_v34, %v616_v39  ;;  %v927_v48 = vpop.f32.mrb[6].mxu1 }
 0x1be   :  { %v486_v49 = vadd.f32 %v485_v40, %v484_v31  ;;  %v598_v50 = vmax.f32 %v596_v32, %v597_v41  ;;  %v496_v51 = vsel %vm272_vm2, %v468_v42, 0.0  ;;  %v608_v52 = vsel %vm272_vm2, %v468_v42, -inf  ;;  %v417_v53 = vpop.f32.mrb[7].mxu1 }
 0x1bf   :  { %v494_v54 = vrot.slane %v493_v44, 1  ;;  %v606_v55 = vrot.slane %v605_v45, 1  ;;  %v506_v56 = vrot.slane %v505_v46, 2  ;;  %v618_v57 = vrot.slane %v617_v47, 2 }
 0x1c0   :  { %v487_v58 = vrot.slane %v486_v49, 1  ;;  %v599_v59 = vrot.slane %v598_v50, 1  ;;  %v497_v60 = vrot.slane %v496_v51, 4  ;;  %v609_v61 = vrot.slane %v608_v52, 4 }
 0x1c1   :  { %v495_v62 = vadd.f32 %v494_v54, %v493_v44  ;;  %v607_v63 = vmax.f32 %v605_v45, %v606_v55  ;;  %v507_v0 = vadd.f32 %v506_v56, %v505_v46  ;;  %v619_v1 = vmax.f32 %v617_v47, %v618_v57  ;;  %v1109_v2 = vpop.f32.mrb[8].mxu1 }
 0x1c2   :  { %v488_v3 = vadd.f32 %v487_v58, %v486_v49  ;;  %v600_v4 = vmax.f32 %v598_v50, %v599_v59  ;;  %v498_v5 = vadd.f32 %v497_v60, %v496_v51  ;;  %v610_v6 = vmax.f32 %v608_v52, %v609_v61  ;;  %v1111_v7 = vpop.f32.mrb[9].mxu1 }
 0x1c3   :  { %v707_v9 = vmul.f32 0.125, %v495_v62  ;;  %v508_v10 = vrot.slane %v507_v0, 1  ;;  %v620_v11 = vrot.slane %v619_v1, 1  ;;  %v471_v12 = vmax.f32 %v413_v43, 0.0 }
 0x1c4   :  { %v706_v13 = vmul.f32 0.125, %v488_v3  ;;  %v499_v14 = vrot.slane %v498_v5, 2  ;;  %v611_v15 = vrot.slane %v610_v6, 2  ;;  %v408_v16 = vadd.f32 %v1094_v8, %v407_v35 }
 0x1c5   :  { %v723_v17 = vadd.f32 %v707_v9, %v607_v63  ;;  %v509_v18 = vadd.f32 %v508_v10, %v507_v0  ;;  %v621_v19 = vmax.f32 %v619_v1, %v620_v11  ;;  %v517_v20 = vsel %vm272_vm2, %v471_v12, 0.0  ;;  %v1115_v21 = vpop.f32.mrb[10].mxu1 }
 0x1c6   :  { %v722_v22 = vadd.f32 %v706_v13, %v600_v4  ;;  %v500_v23 = vadd.f32 %v499_v14, %v498_v5  ;;  %v612_v24 = vmax.f32 %v610_v6, %v611_v15  ;;  %v518_v25 = vrot.slane %v517_v20, 4  ;;  %v1117_v26 = vpop.f32.mrb[11].mxu1 }
 0x1c7   :  { %v709_v27 = vmul.f32 0.125, %v509_v18  ;;  %v629_v28 = vsel %vm272_vm2, %v471_v12, -inf  ;;  %v470_v29 = vmax.f32 %v408_v16, 0.0  ;;  %v423_v30 = vadd.f32 %v927_v48, %v1094_v8 }
 0x1c8   :  { %v755_v31 = vsel %vm754_vm3, %v723_v17, %v722_v22  ;;  %v501_v32 = vrot.slane %v500_v23, 1  ;;  %v613_v33 = vrot.slane %v612_v24, 1  ;;  %v519_v34 = vadd.f32 %v518_v25, %v517_v20 }
 0x1c9   :  { %v630_v35 = vrot.slane %v629_v28, 4  ;;  %v510_v36 = vsel %vm272_vm2, %v470_v29, 0.0  ;;  %v622_v37 = vsel %vm272_vm2, %v470_v29, -inf  ;;  %v1124_v38 = vpop.f32.mrb[12].mxu1  ;;  %v725_v39 = vadd.f32 %v709_v27, %v621_v19 }
 0x1ca   :  { %v502_v40 = vadd.f32 %v501_v32, %v500_v23  ;;  %v520_v41 = vrot.slane %v519_v34, 2  ;;  %v511_v42 = vrot.slane %v510_v36, 4  ;;  %v1126_v43 = vpop.f32.mrb[13].mxu1  ;;  %v623_v45 = vrot.slane %v622_v37, 4 }
 0x1cb   :  { %v631_v44 = vmax.f32 %v629_v28, %v630_v35  ;;  %v473_v46 = vmax.f32 %v423_v30, 0.0  ;;  %v418_v47 = vadd.f32 %v1094_v8, %v417_v53  ;;  %v614_v48 = vmax.f32 %v612_v24, %v613_v33 }
 0x1cc   :  { %v708_v49 = vmul.f32 0.125, %v502_v40  ;;  %v521_v50 = vadd.f32 %v520_v41, %v519_v34  ;;  %v512_v51 = vadd.f32 %v511_v42, %v510_v36  ;;  %v624_v54 = vmax.f32 %v622_v37, %v623_v45 }
 0x1cd   :  { %v632_v52 = vrot.slane %v631_v44, 2  ;;  %v531_v55 = vsel %vm272_vm2, %v473_v46, 0.0  ;;  %v643_v56 = vsel %vm272_vm2, %v473_v46, -inf  ;;  %v1131_v57 = vpop.f32.mrb[14].mxu1  ;;  %v472_v1 = vmax.f32 %v418_v47, 0.0 }
 0x1ce   :  { %v724_v58 = vadd.f32 %v708_v49, %v614_v48  ;;  %v522_v59 = vrot.slane %v521_v50, 1  ;;  %v513_v60 = vrot.slane %v512_v51, 2  ;;  %v532_v61 = vrot.slane %v531_v55, 4  ;;  %v1133_v62 = vpop.f32.mrb[15].mxu1 }
 0x1cf   :  { %v633_v63 = vmax.f32 %v631_v44, %v632_v52  ;;  %v625_v53 = vrot.slane %v624_v54, 2  ;;  %v644_v0 = vrot.slane %v643_v56, 4  ;;  %v433_v6 = vadd.f32 %v1109_v2, %v1094_v8 }
 0x1d0   :  { %v757_v3 = vsel %vm756_vm4, %v724_v58, %v755_v31  ;;  %v514_v4 = vadd.f32 %v513_v60, %v512_v51  ;;  %v533_v5 = vadd.f32 %v532_v61, %v531_v55  ;;  %v523_v9 = vadd.f32 %v522_v59, %v521_v50 }
 0x1d1   :  { %v626_v10 = vmax.f32 %v624_v54, %v625_v53  ;;  %v759_v11 = vsel %vm758_vm5, %v725_v39, %v757_v3  ;;  %v645_v12 = vmax.f32 %v643_v56, %v644_v0  ;;  %v524_v15 = vsel %vm272_vm2, %v472_v1, 0.0 }
 0x1d2   :  { %v515_v13 = vrot.slane %v514_v4, 1  ;;  %v534_v14 = vrot.slane %v533_v5, 2  ;;  %v634_v16 = vrot.slane %v633_v63, 1  ;;  %v525_v19 = vrot.slane %v524_v15, 4 }
 0x1d3   :  { %v627_v17 = vrot.slane %v626_v10, 1  ;;  %v646_v18 = vrot.slane %v645_v12, 2  ;;  %v636_v23 = vsel %vm272_vm2, %v472_v1, -inf  ;;  %v475_v24 = vmax.f32 %v433_v6, 0.0 }
 0x1d4   :  { %v516_v20 = vadd.f32 %v515_v13, %v514_v4  ;;  %v535_v22 = vadd.f32 %v534_v14, %v533_v5  ;;  %v711_v2 = vmul.f32 0.125, %v523_v9  ;;  %v526_v28 = vadd.f32 %v525_v19, %v524_v15 }
 0x1d5   :  { %v628_v25 = vmax.f32 %v626_v10, %v627_v17  ;;  %v647_v27 = vmax.f32 %v645_v12, %v646_v18  ;;  %v637_v31 = vrot.slane %v636_v23, 4  ;;  %v545_v32 = vsel %vm272_vm2, %v475_v24, 0.0 }
 0x1d6   :  { %v710_v29 = vmul.f32 0.125, %v516_v20  ;;  %v536_v30 = vrot.slane %v535_v22, 1  ;;  %v635_v33 = vmax.f32 %v633_v63, %v634_v16  ;;  %v527_v34 = vrot.slane %v526_v28, 2 }
 0x1d7   :  { %v546_v35 = vrot.slane %v545_v32, 4  ;;  %v657_v36 = vsel %vm272_vm2, %v475_v24, -inf  ;;  %v648_v39 = vrot.slane %v647_v27, 1  ;;  %v638_v40 = vmax.f32 %v636_v23, %v637_v31 }
 0x1d8   :  { %v726_v37 = vadd.f32 %v710_v29, %v628_v25  ;;  %v658_v41 = vrot.slane %v657_v36, 4  ;;  %v1143_v42 = vadd.f32 %v711_v2, %v635_v33  ;;  %v528_v44 = vadd.f32 %v527_v34, %v526_v28 }
 0x1d9   :  { %v547_v45 = vadd.f32 %v546_v35, %v545_v32  ;;  %v428_v46 = vadd.f32 %v1094_v8, %v1111_v7  ;;  %v537_v48 = vadd.f32 %v536_v30, %v535_v22  ;;  %v639_v49 = vrot.slane %v638_v40, 2 }
 0x1da   :  { %v1148_v47 = vsel %vm760_vm6, %v726_v37, %v759_v11  ;;  %v659_v50 = vmax.f32 %v657_v36, %v658_v41  ;;  %v529_v51 = vrot.slane %v528_v44, 1  ;;  %v443_v55 = vadd.f32 %v1115_v21, %v1094_v8 }
 0x1db   :  { %v548_v52 = vrot.slane %v547_v45, 2  ;;  %v474_v54 = vmax.f32 %v428_v46, 0.0  ;;  %v1152_v56 = vmax.f32 %v647_v27, %v648_v39  ;;  %v640_v58 = vmax.f32 %v638_v40, %v639_v49 }
 0x1dc   :  { %v660_v59 = vrot.slane %v659_v50, 2  ;;  %v438_v60 = vadd.f32 %v1094_v8, %v1117_v26  ;;  %v530_v7 = vadd.f32 %v529_v51, %v528_v44  ;;  %v1158_v5 = vmul.f32 0.125, %v537_v48 }
 0x1dd   :  { %v549_v61 = vadd.f32 %v548_v52, %v547_v45  ;;  %v538_v63 = vsel %vm272_vm2, %v474_v54, 0.0  ;;  %v650_v53 = vsel %vm272_vm2, %v474_v54, -inf  ;;  %v641_v0 = vrot.slane %v640_v58, 1 }
 0x1de   :  { %v661_v1 = vmax.f32 %v659_v50, %v660_v59  ;;  %v539_v3 = vrot.slane %v538_v63, 4  ;;  %v651_v4 = vrot.slane %v650_v53, 4  ;;  %v477_v6 = vmax.f32 %v443_v55, 0.0 }
 0x1df   :  { %v550_v21 = vrot.slane %v549_v61, 1  ;;  %v476_v9 = vmax.f32 %v438_v60, 0.0  ;;  %v712_v10 = vmul.f32 0.125, %v530_v7  ;;  %v642_v17 = vmax.f32 %v640_v58, %v641_v0 }
 0x1e0   :  { %v662_v11 = vrot.slane %v661_v1, 1  ;;  %v540_v12 = vadd.f32 %v539_v3, %v538_v63  ;;  %v652_v13 = vmax.f32 %v650_v53, %v651_v4  ;;  %v559_v14 = vsel %vm272_vm2, %v477_v6, 0.0 }
 0x1e1   :  { %v551_v26 = vadd.f32 %v550_v21, %v549_v61  ;;  %v671_v15 = vsel %vm272_vm2, %v477_v6, -inf  ;;  %v552_v16 = vsel %vm272_vm2, %v476_v9, 0.0  ;;  %v560_v23 = vrot.slane %v559_v14, 4 }
 0x1e2   :  { %v663_v18 = vmax.f32 %v661_v1, %v662_v11  ;;  %v541_v19 = vrot.slane %v540_v12, 2  ;;  %v653_v20 = vrot.slane %v652_v13, 2  ;;  %v672_v24 = vrot.slane %v671_v15, 4 }
 0x1e3   :  { %v715_v22 = vmul.f32 0.125, %v551_v26  ;;  %v553_v2 = vrot.slane %v552_v16, 4  ;;  %v664_v28 = vsel %vm272_vm2, %v476_v9, -inf  ;;  %v453_v29 = vadd.f32 %v1124_v38, %v1094_v8 }
 0x1e4   :  { %v542_v25 = vadd.f32 %v541_v19, %v540_v12  ;;  %v654_v27 = vmax.f32 %v652_v13, %v653_v20  ;;  %v561_v31 = vadd.f32 %v560_v23, %v559_v14  ;;  %v673_v32 = vmax.f32 %v671_v15, %v672_v24 }
 0x1e5   :  { %v731_v30 = vadd.f32 %v715_v22, %v663_v18  ;;  %v554_v33 = vadd.f32 %v553_v2, %v552_v16  ;;  %v665_v36 = vrot.slane %v664_v28, 4  ;;  %v479_v37 = vmax.f32 %v453_v29, 0.0 }
 0x1e6   :  { %v543_v34 = vrot.slane %v542_v25, 1  ;;  %v655_v35 = vrot.slane %v654_v27, 1  ;;  %v562_v39 = vrot.slane %v561_v31, 2  ;;  %v674_v40 = vrot.slane %v673_v32, 2 }
 0x1e7   :  { %v555_v41 = vrot.slane %v554_v33, 2  ;;  %v448_v44 = vadd.f32 %v1094_v8, %v1126_v43  ;;  %v666_v48 = vmax.f32 %v664_v28, %v665_v36  ;;  %v573_v49 = vsel %vm272_vm2, %v479_v37, 0.0 }
 0x1e8   :  { %v544_v45 = vadd.f32 %v543_v34, %v542_v25  ;;  %v656_v46 = vmax.f32 %v654_v27, %v655_v35  ;;  %v563_v38 = vadd.f32 %v562_v39, %v561_v31  ;;  %v675_v50 = vmax.f32 %v673_v32, %v674_v40 }
 0x1e9   :  { %v556_v51 = vadd.f32 %v555_v41, %v554_v33  ;;  %v574_v52 = vrot.slane %v573_v49, 4  ;;  %v667_v55 = vrot.slane %v666_v48, 2  ;;  %v685_v58 = vsel %vm272_vm2, %v479_v37, -inf }
 0x1ea   :  { %v714_v54 = vmul.f32 0.125, %v544_v45  ;;  %v478_v59 = vmax.f32 %v448_v44, 0.0  ;;  %v728_v60 = vadd.f32 %v712_v10, %v642_v17  ;;  %v564_v7 = vrot.slane %v563_v38, 1 }
 0x1eb   :  { %v557_v61 = vrot.slane %v556_v51, 1  ;;  %v575_v63 = vadd.f32 %v574_v52, %v573_v49  ;;  %v668_v53 = vmax.f32 %v666_v48, %v667_v55  ;;  %v686_v0 = vrot.slane %v685_v58, 4 }
 0x1ec   :  { %v730_v43 = vadd.f32 %v714_v54, %v656_v46  ;;  %v566_v1 = vsel %vm272_vm2, %v478_v59, 0.0  ;;  %v565_v3 = vadd.f32 %v564_v7, %v563_v38  ;;  %v676_v4 = vrot.slane %v675_v50, 1 }
 0x1ed   :  { %v558_v21 = vadd.f32 %v557_v61, %v556_v51  ;;  %v576_v6 = vrot.slane %v575_v63, 2  ;;  %v669_v11 = vrot.slane %v668_v53, 1  ;;  %v687_v12 = vmax.f32 %v685_v58, %v686_v0 }
 0x1ee   :  { %v768_v9 = vsel %vm754_vm3, %v731_v30, %v730_v43  ;;  %v567_v13 = vrot.slane %v566_v1, 4  ;;  %v717_v10 = vmul.f32 0.125, %v565_v3  ;;  %v678_v15 = vsel %vm272_vm2, %v478_v59, -inf }
 0x1ef   :  { %v716_v26 = vmul.f32 0.125, %v558_v21  ;;  %v577_v14 = vadd.f32 %v576_v6, %v575_v63  ;;  %v670_v16 = vmax.f32 %v668_v53, %v669_v11  ;;  %v688_v17 = vrot.slane %v687_v12, 2 }
 0x1f0   :  { %v568_v18 = vadd.f32 %v567_v13, %v566_v1  ;;  %v679_v19 = vrot.slane %v678_v15, 4  ;;  %v677_v20 = vmax.f32 %v675_v50, %v676_v4  ;;  %v463_v23 = vadd.f32 %v1131_v57, %v1094_v8 }
 0x1f1   :  { %v578_v22 = vrot.slane %v577_v14, 1  ;;  %v458_v24 = vadd.f32 %v1094_v8, %v1133_v62  ;;  %v732_v2 = vadd.f32 %v716_v26, %v670_v16  ;;  %v689_v25 = vmax.f32 %v687_v12, %v688_v17 }
 0x1f2   :  { %v569_v27 = vrot.slane %v568_v18, 2  ;;  %v680_v28 = vmax.f32 %v678_v15, %v679_v19  ;;  %v733_v29 = vadd.f32 %v717_v10, %v677_v20  ;;  %v481_v30 = vmax.f32 %v463_v23, 0.0 }
 0x1f3   :  { %v480_v31 = vmax.f32 %v458_v24, 0.0  ;;  %v763_v32 = vsel %vm762_vm7, %v1143_v42, %v1148_v47  ;;  %v769_v33 = vsel %vm756_vm4, %v732_v2, %v768_v9  ;;  %v579_v34 = vadd.f32 %v578_v22, %v577_v14 }
 0x1f4   :  { %v570_v35 = vadd.f32 %v569_v27, %v568_v18  ;;  %v681_v36 = vrot.slane %v680_v28, 2  ;;  %v729_v57 = vadd.f32 %v1158_v5, %v1152_v56  ;;  %v770_v8 = vsel %vm758_vm5, %v733_v29, %v769_v33 }
 0x1f5   :  { %v587_v62 = vsel %vm272_vm2, %v481_v30, 0.0  ;;  %v699_v37 = vsel %vm272_vm2, %v481_v30, -inf  ;;  %v690_v39 = vrot.slane %v689_v25, 1  ;;  %v580_v42 = vsel %vm272_vm2, %v480_v31, 0.0 }
 0x1f6   :  { %v571_v40 = vrot.slane %v570_v35, 1  ;;  %v682_v41 = vmax.f32 %v680_v28, %v681_v36  ;;  %v588_v44 = vrot.slane %v587_v62, 4  ;;  %v700_v45 = vrot.slane %v699_v37, 4 }
 0x1f7   :  { %v692_v47 = vsel %vm272_vm2, %v480_v31, -inf  ;;  %v765_v46 = vsel %vm764_vm8, %v728_v60, %v763_v32  ;;  %v719_v48 = vmul.f32 0.125, %v579_v34  ;;  %v581_v50 = vrot.slane %v580_v42, 4 }
 0x1f8   :  { %v572_v49 = vadd.f32 %v571_v40, %v570_v35  ;;  %v683_v56 = vrot.slane %v682_v41, 1  ;;  %v589_v5 = vadd.f32 %v588_v44, %v587_v62  ;;  %v701_v38 = vmax.f32 %v699_v37, %v700_v45 }
 0x1f9   :  { %v693_v51 = vrot.slane %v692_v47, 4  ;;  %v767_v52 = vsel %vm766_vm9, %v729_v57, %v765_v46  ;;  %v691_v59 = vmax.f32 %v689_v25, %v690_v39  ;;  %v582_v61 = vadd.f32 %v581_v50, %v580_v42 }
 0x1fa   :  { %v684_v54 = vmax.f32 %v682_v41, %v683_v56  ;;  %v718_v55 = vmul.f32 0.125, %v572_v49  ;;  %v590_v58 = vrot.slane %v589_v5, 2  ;;  %777 = vst.msk [vmem:[#allocation2] sm:$0xff] %vm272_vm2, %v767_v52  ;;  %v702_v7 = vrot.slane %v701_v38, 2 }
 0x1fb   :  { %v694_v63 = vmax.f32 %v692_v47, %v693_v51  ;;  %v735_v53 = vadd.f32 %v719_v48, %v691_v59  ;;  %v583_v0 = vrot.slane %v582_v61, 2 }
 0x1fc   :  { %v734_v43 = vadd.f32 %v718_v55, %v684_v54  ;;  %v591_v60 = vadd.f32 %v590_v58, %v589_v5  ;;  %v703_v21 = vmax.f32 %v701_v38, %v702_v7 }
 0x1fd   :  { %v695_v1 = vrot.slane %v694_v63, 2  ;;  %v584_v6 = vadd.f32 %v583_v0, %v582_v61 }
 0x1fe   :  { %v771_v3 = vsel %vm760_vm6, %v734_v43, %v770_v8  ;;  %v592_v4 = vrot.slane %v591_v60, 1  ;;  %v704_v26 = vrot.slane %v703_v21, 1 }
 0x1ff   :  { %v696_v9 = vmax.f32 %v694_v63, %v695_v1  ;;  %v772_v11 = vsel %vm762_vm7, %v735_v53, %v771_v3  ;;  %v585_v13 = vrot.slane %v584_v6, 1 }
 0x200   :  { %v593_v12 = vadd.f32 %v592_v4, %v591_v60  ;;  %v705_v18 = vmax.f32 %v703_v21, %v704_v26 }
 0x201   :  { %v697_v10 = vrot.slane %v696_v9, 1  ;;  %v586_v14 = vadd.f32 %v585_v13, %v584_v6 }
 0x202   :  { %v721_v15 = vmul.f32 0.125, %v593_v12 }
 0x203   :  { %v698_v16 = vmax.f32 %v696_v9, %v697_v10  ;;  %v720_v17 = vmul.f32 0.125, %v586_v14 }
 0x204   :  { %v737_v20 = vadd.f32 %v721_v15, %v705_v18 }
 0x205   :  { %v736_v19 = vadd.f32 %v720_v17, %v698_v16 }
 0x207   :  { %v773_v22 = vsel %vm764_vm8, %v736_v19, %v772_v11 }
 0x208   :  { %v774_v23 = vsel %vm766_vm9, %v737_v20, %v773_v22 }
 0x209   :  { %778 = vst.msk [vmem:[#allocation2 + $0x8] sm:$0xff] %vm272_vm2, %v774_v23 }
 0x20a   :  { %962 = shalt.err (!%p959_p4)
}
 0x20b   :  { %s963_s30 = scalar_lea.hbm %s1210_s2, 256 }
 0x20c   :  { %p964_p5 = scmp.ne.s32.totalorder %s1210_s2, %s963_s30  ;;  %p967_p6 = scmp.lt.u32.totalorder %s963_s30, %s1210_s2 }
 0x20e   :  { %p969_p7 = pnand %p967_p6, %p964_p5 }
 0x210   :  { %972 = shalt.err (!%p969_p7)
}
 0x211   :  { %s976_s7 = smov 128   ;;  %s977_s8 = smov 8  }
 0x212   :  { %790 = dma.vmem_to_hbm [thread:$0]  %s785_s26, 256, %s1210_s2, [#allocation3], %s976_s7, %s976_s7, %s977_s8  }
 0x213   :  { %973 = dma.done.wait [#allocation3], 256  }
 0x214   :  { %974 = vsyncadd [#allocation3], 4294967040 }
 0x215   :  { %794 = vsyncpa [#allocation3], 1 }

</bundles_post_ra>
